<compile_context>
chip_gen: v5e
topology: v5e:2x2
jax: 0.10.0
libtpu: 0.0.40
codegen_flags: <defaults>
</compile_context>

<pallas_src>
import jax
import jax.numpy as jnp
from jax.experimental import pallas as pl
from jax.experimental.pallas import tpu as pltpu

# ------------------------- problem sizes (small, synthetic) -------------------------
B, S, D = 2, 8, 32          # batch, seq, d_model
H = 4                       # attention heads
DH = D // H                 # head dim
DFF = 64                    # feed-forward hidden dim
EPS = 1e-5                  # LayerNorm eps (torch default)


def _layernorm(x, g, b):
    mu = jnp.mean(x, axis=-1, keepdims=True)
    var = jnp.mean((x - mu) ** 2, axis=-1, keepdims=True)
    return (x - mu) * jax.lax.rsqrt(var + EPS) * g + b


# ------------------------- fused encoder-block kernel -------------------------------
def encoder_block_kernel(x_ref, maskb_ref, ln_ref, wqkv_ref, bqkv_ref,
                         wo_ref, bo_ref, w1_ref, b1_ref, w2_ref, b2_ref, o_ref):
    x = x_ref[...].reshape(B * S, D)          # flatten (B,S,D) -> (B*S, D) rows
    ln = ln_ref[...]                          # (4, D): [ln1_g, ln1_b, ln2_g, ln2_b]

    # ---------------- sublayer 1: LN -> MHA -> residual ----------------
    xn = _layernorm(x, ln[0:1], ln[1:2])
    # fused QKV projection; 1/sqrt(DH) already folded into the Q columns/bias.
    qkv = jnp.dot(xn, wqkv_ref[...], preferred_element_type=jnp.float32) + bqkv_ref[...]

    def split_heads(m):                       # (B*S, D) -> (H, B*S, DH)
        return jnp.stack([m[:, h * DH:(h + 1) * DH] for h in range(H)], axis=0)

    q = split_heads(qkv[:, 0 * D:1 * D])
    k = split_heads(qkv[:, 1 * D:2 * D])
    v = split_heads(qkv[:, 2 * D:3 * D])

    outs = []
    for b in range(B):                        # static unroll, B is tiny
        rows = slice(b * S, (b + 1) * S)
        qb = q[:, rows, :]                    # (H, S, DH)
        kb = k[:, rows, :]
        vb = v[:, rows, :]
        # head-batched score contraction (leading batch dim = canonical form)
        s = jnp.einsum("hqd,hkd->hqk", qb, kb,
                       preferred_element_type=jnp.float32)           # (H, S, S)
        s = s + maskb_ref[b][None, :, :]      # additive mask bias, shared over heads
        s = s - jnp.max(s, axis=-1, keepdims=True)
        p = jnp.exp(s)
        p = p * pl.reciprocal(jnp.sum(p, axis=-1, keepdims=True), approx=True)
        a = jnp.einsum("hqk,hkd->hqd", p, vb,
                       preferred_element_type=jnp.float32)           # (H, S, DH)
        # output projection, head-decomposed: concat_h(a_h) @ Wo == sum_h a_h @ Wo_h
        ob = jnp.sum(jnp.einsum("hqd,hdn->hqn", a, wo_ref[...],
                                preferred_element_type=jnp.float32), axis=0)  # (S, D)
        outs.append(ob)
    attn = jnp.concatenate(outs, axis=0)      # (B*S, D) row-axis concat (cheap)
    x = x + attn + bo_ref[...]                # residual; dropout == identity (eval)

    # ---------------- sublayer 2: LN -> FFN -> residual ----------------
    xn2 = _layernorm(x, ln[2:3], ln[3:4])
    h1 = jnp.dot(xn2, w1_ref[...], preferred_element_type=jnp.float32) + b1_ref[...]
    h1 = jnp.maximum(h1, 0.0)                 # ReLU
    x = x + jnp.dot(h1, w2_ref[...], preferred_element_type=jnp.float32) + b2_ref[...]

    o_ref[...] = x.reshape(B, S, D)


# ------------------------- wrapper ---------------------------------------------------
def _full(shape):
    # whole array resident in VMEM, single grid step
    return pl.BlockSpec(shape, lambda i: (0,) * len(shape))


@jax.jit
def encoder_block(x, mask, p):
    scale = 1.0 / jnp.sqrt(jnp.float32(DH))
    # pack QKV weights; fold the attention scale into the Q columns / bias
    wqkv = jnp.concatenate([p["wq"] * scale, p["wk"], p["wv"]], axis=1)   # (D, 3D)
    bqkv = jnp.concatenate([p["bq"] * scale, p["bk"], p["bv"]], axis=1)   # (1, 3D)
    # pack LayerNorm params
    ln = jnp.concatenate([p["ln1_g"], p["ln1_b"], p["ln2_g"], p["ln2_b"]], axis=0)  # (4, D)
    # per-head view of the output projection (reshape done by XLA, outside the kernel)
    wo3 = p["wo"].reshape(H, DH, D)
    # additive attention-mask bias: 0 where attend, -1e9 where masked
    mask_bias = (mask - 1.0) * 1e9

    in_specs = [
        _full((B, S, D)),        # x
        _full((B, S, S)),        # mask bias
        _full((4, D)),           # packed LN params
        _full((D, 3 * D)),       # Wqkv (scale folded into Q part)
        _full((1, 3 * D)),       # bqkv
        _full((H, DH, D)),       # Wo, per-head
        _full((1, D)),           # bo
        _full((D, DFF)),         # W1
        _full((1, DFF)),         # b1
        _full((DFF, D)),         # W2
        _full((1, D)),           # b2
    ]
    return pl.pallas_call(
        encoder_block_kernel,
        out_shape=jax.ShapeDtypeStruct((B, S, D), jnp.float32),
        grid=(1,),               # single step: whole batch resident in VMEM
        in_specs=in_specs,
        out_specs=_full((B, S, D)),
        compiler_params=pltpu.CompilerParams(dimension_semantics=("parallel",)),
    )(x, mask_bias, ln, wqkv, bqkv, wo3, p["bo"], p["w1"], p["b1"], p["w2"], p["b2"])


# ------------------------- pure-JAX reference (for correctness) ----------------------
def encoder_block_ref(x, mask, p):
    def ln(t, g, b):
        mu = t.mean(-1, keepdims=True)
        var = ((t - mu) ** 2).mean(-1, keepdims=True)
        return (t - mu) / jnp.sqrt(var + EPS) * g + b

    # attention sublayer
    xn = ln(x, p["ln1_g"], p["ln1_b"])
    q = xn @ p["wq"] + p["bq"]
    k = xn @ p["wk"] + p["bk"]
    v = xn @ p["wv"] + p["bv"]
    q = q.reshape(B, S, H, DH).transpose(0, 2, 1, 3)
    k = k.reshape(B, S, H, DH).transpose(0, 2, 1, 3)
    v = v.reshape(B, S, H, DH).transpose(0, 2, 1, 3)
    s = jnp.einsum("bhqd,bhkd->bhqk", q, k) / jnp.sqrt(jnp.float32(DH))
    s = jnp.where(mask[:, None, :, :] == 0, -1e9, s)
    p_attn = jax.nn.softmax(s, axis=-1)
    a = jnp.einsum("bhqk,bhkd->bhqd", p_attn, v)
    a = a.transpose(0, 2, 1, 3).reshape(B, S, D)
    x = x + (a @ p["wo"] + p["bo"])

    # feed-forward sublayer
    xn = ln(x, p["ln2_g"], p["ln2_b"])
    h1 = jnp.maximum(xn @ p["w1"] + p["b1"], 0.0)
    x = x + (h1 @ p["w2"] + p["b2"])
    return x


# ------------------------- main -------------------------------------------------------
if __name__ == "__main__":
    key = jax.random.PRNGKey(0)
    ks = jax.random.split(key, 12)

    def init(k, shape, scale=0.1):
        return jax.random.normal(k, shape, jnp.float32) * scale

    params = {
        "ln1_g": jnp.ones((1, D), jnp.float32),
        "ln1_b": jnp.zeros((1, D), jnp.float32),
        "wq": init(ks[0], (D, D)), "bq": init(ks[1], (1, D)),
        "wk": init(ks[2], (D, D)), "bk": init(ks[3], (1, D)),
        "wv": init(ks[4], (D, D)), "bv": init(ks[5], (1, D)),
        "wo": init(ks[6], (D, D)), "bo": init(ks[7], (1, D)),
        "ln2_g": jnp.ones((1, D), jnp.float32),
        "ln2_b": jnp.zeros((1, D), jnp.float32),
        "w1": init(ks[8], (D, DFF)), "b1": init(ks[9], (1, DFF)),
        "w2": init(ks[10], (DFF, D)), "b2": init(ks[11], (1, D)),
    }

    x = jax.random.normal(jax.random.PRNGKey(42), (B, S, D), jnp.float32)
    mask = jnp.ones((B, S, S), jnp.float32)
    mask = mask.at[1, :, -2:].set(0.0)   # mask out last 2 key positions in batch 1

    out = jax.block_until_ready(encoder_block(x, mask, params))
    ref = encoder_block_ref(x, mask, params)

    assert out.shape == (B, S, D)
    # tolerance slightly loosened vs f32-exact to allow the EUP approx-reciprocal
    # used in the softmax normalization.
    assert jnp.allclose(out, ref, rtol=2e-3, atol=2e-3), "mismatch vs. JAX reference"
    # TODO(synk): dropout is a no-op here (eval-mode semantics); training-mode dropout
    # would use pltpu.prng_seed / pltpu.prng_random_bits.
    print("KERNEL_OK")
</pallas_src>

<mosaic_0001>
module attributes {stable_mosaic.version = 11 : i64} {
  func.func @encoder_block_kernel(%arg0: i32, %arg1: memref<2x8x32xf32, #tpu.memory_space<vmem>>, %arg2: memref<2x8x8xf32, #tpu.memory_space<vmem>>, %arg3: memref<4x32xf32, #tpu.memory_space<vmem>>, %arg4: memref<32x96xf32, #tpu.memory_space<vmem>>, %arg5: memref<1x96xf32, #tpu.memory_space<vmem>>, %arg6: memref<4x8x32xf32, #tpu.memory_space<vmem>>, %arg7: memref<1x32xf32, #tpu.memory_space<vmem>>, %arg8: memref<32x64xf32, #tpu.memory_space<vmem>>, %arg9: memref<1x64xf32, #tpu.memory_space<vmem>>, %arg10: memref<64x32xf32, #tpu.memory_space<vmem>>, %arg11: memref<1x32xf32, #tpu.memory_space<vmem>>, %arg12: memref<2x8x32xf32, #tpu.memory_space<vmem>>) attributes {dimension_semantics = [#tpu.dimension_semantics<parallel>], iteration_bounds = array<i64: 1>, scalar_prefetch = 0 : i64, scratch_operands = 0 : i64, tpu.core_type = #tpu.core_type<tc>, window_params = [{pipeline_mode = #tpu.pipeline_mode<synchronous>, transform_indices = @transform_0, window_bounds = array<i64: 2, 8, 32>}, {pipeline_mode = #tpu.pipeline_mode<synchronous>, transform_indices = @transform_1, window_bounds = array<i64: 2, 8, 8>}, {pipeline_mode = #tpu.pipeline_mode<synchronous>, transform_indices = @transform_2, window_bounds = array<i64: 4, 32>}, {pipeline_mode = #tpu.pipeline_mode<synchronous>, transform_indices = @transform_3, window_bounds = array<i64: 32, 96>}, {pipeline_mode = #tpu.pipeline_mode<synchronous>, transform_indices = @transform_4, window_bounds = array<i64: 1, 96>}, {pipeline_mode = #tpu.pipeline_mode<synchronous>, transform_indices = @transform_5, window_bounds = array<i64: 4, 8, 32>}, {pipeline_mode = #tpu.pipeline_mode<synchronous>, transform_indices = @transform_6, window_bounds = array<i64: 1, 32>}, {pipeline_mode = #tpu.pipeline_mode<synchronous>, transform_indices = @transform_7, window_bounds = array<i64: 32, 64>}, {pipeline_mode = #tpu.pipeline_mode<synchronous>, transform_indices = @transform_8, window_bounds = array<i64: 1, 64>}, {pipeline_mode = #tpu.pipeline_mode<synchronous>, transform_indices = @transform_9, window_bounds = array<i64: 64, 32>}, {pipeline_mode = #tpu.pipeline_mode<synchronous>, transform_indices = @transform_10, window_bounds = array<i64: 1, 32>}, {pipeline_mode = #tpu.pipeline_mode<synchronous>, transform_indices = @transform_11, window_bounds = array<i64: 2, 8, 32>}]} {
    %c0 = arith.constant 0 : index
    %c0_0 = arith.constant 0 : index
    %c0_1 = arith.constant 0 : index
    %0 = vector.load %arg1[%c0, %c0_0, %c0_1] : memref<2x8x32xf32, #tpu.memory_space<vmem>>, vector<2x8x32xf32>
    %1 = vector.shape_cast %0 : vector<2x8x32xf32> to vector<16x32xf32>
    %c0_2 = arith.constant 0 : index
    %c0_3 = arith.constant 0 : index
    %2 = vector.load %arg3[%c0_2, %c0_3] : memref<4x32xf32, #tpu.memory_space<vmem>>, vector<4x32xf32>
    %3 = vector.extract_strided_slice %2 {offsets = [0, 0], sizes = [1, 32], strides = [1, 1]} : vector<4x32xf32> to vector<1x32xf32>
    %4 = vector.extract_strided_slice %2 {offsets = [1, 0], sizes = [1, 32], strides = [1, 1]} : vector<4x32xf32> to vector<1x32xf32>
    %cst = arith.constant dense<0.000000e+00> : vector<16xf32>
    %5 = vector.multi_reduction <add>, %1, %cst [1] : vector<16x32xf32> to vector<16xf32>
    %6 = vector.shape_cast %5 : vector<16xf32> to vector<16x1xf32>
    %cst_4 = arith.constant 3.200000e+01 : f32
    %7 = vector.broadcast %cst_4 : f32 to vector<16x1xf32>
    %8 = arith.divf %6, %7 : vector<16x1xf32>
    %9 = vector.broadcast %8 : vector<16x1xf32> to vector<16x32xf32>
    %10 = arith.subf %1, %9 : vector<16x32xf32>
    %11 = arith.mulf %10, %10 : vector<16x32xf32>
    %cst_5 = arith.constant dense<0.000000e+00> : vector<16xf32>
    %12 = vector.multi_reduction <add>, %11, %cst_5 [1] : vector<16x32xf32> to vector<16xf32>
    %13 = vector.shape_cast %12 : vector<16xf32> to vector<16x1xf32>
    %cst_6 = arith.constant 3.200000e+01 : f32
    %14 = vector.broadcast %cst_6 : f32 to vector<16x1xf32>
    %15 = arith.divf %13, %14 : vector<16x1xf32>
    %16 = vector.broadcast %8 : vector<16x1xf32> to vector<16x32xf32>
    %17 = arith.subf %1, %16 : vector<16x32xf32>
    %cst_7 = arith.constant 9.99999974E-6 : f32
    %18 = vector.broadcast %cst_7 : f32 to vector<16x1xf32>
    %19 = arith.addf %15, %18 : vector<16x1xf32>
    %20 = math.rsqrt %19 : vector<16x1xf32>
    %21 = vector.broadcast %20 : vector<16x1xf32> to vector<16x32xf32>
    %22 = arith.mulf %17, %21 : vector<16x32xf32>
    %23 = vector.broadcast %3 : vector<1x32xf32> to vector<16x32xf32>
    %24 = arith.mulf %22, %23 : vector<16x32xf32>
    %25 = vector.broadcast %4 : vector<1x32xf32> to vector<16x32xf32>
    %26 = arith.addf %24, %25 : vector<16x32xf32>
    %c0_8 = arith.constant 0 : index
    %c0_9 = arith.constant 0 : index
    %27 = vector.load %arg4[%c0_8, %c0_9] : memref<32x96xf32, #tpu.memory_space<vmem>>, vector<32x96xf32>
    %cst_10 = arith.constant dense<0.000000e+00> : vector<16x96xf32>
    %28 = tpu.matmul %26, %27, %cst_10 {dimension_numbers = #tpu.dot_dimension_numbers<[1], [0], [0], [1], [0, 0, 1, 1], [], []>} : vector<16x32xf32>, vector<32x96xf32>, vector<16x96xf32> -> vector<16x96xf32>
    %c0_11 = arith.constant 0 : index
    %c0_12 = arith.constant 0 : index
    %29 = vector.load %arg5[%c0_11, %c0_12] : memref<1x96xf32, #tpu.memory_space<vmem>>, vector<1x96xf32>
    %30 = vector.broadcast %29 : vector<1x96xf32> to vector<16x96xf32>
    %31 = arith.addf %28, %30 : vector<16x96xf32>
    %32 = vector.extract_strided_slice %31 {offsets = [0, 0], sizes = [16, 32], strides = [1, 1]} : vector<16x96xf32> to vector<16x32xf32>
    %33 = vector.extract_strided_slice %32 {offsets = [0, 0], sizes = [16, 8], strides = [1, 1]} : vector<16x32xf32> to vector<16x8xf32>
    %34 = vector.extract_strided_slice %32 {offsets = [0, 8], sizes = [16, 8], strides = [1, 1]} : vector<16x32xf32> to vector<16x8xf32>
    %35 = vector.extract_strided_slice %32 {offsets = [0, 16], sizes = [16, 8], strides = [1, 1]} : vector<16x32xf32> to vector<16x8xf32>
    %36 = vector.extract_strided_slice %32 {offsets = [0, 24], sizes = [16, 8], strides = [1, 1]} : vector<16x32xf32> to vector<16x8xf32>
    %37 = vector.shape_cast %33 : vector<16x8xf32> to vector<1x16x8xf32>
    %38 = vector.shape_cast %34 : vector<16x8xf32> to vector<1x16x8xf32>
    %39 = vector.shape_cast %35 : vector<16x8xf32> to vector<1x16x8xf32>
    %40 = vector.shape_cast %36 : vector<16x8xf32> to vector<1x16x8xf32>
    %41 = tpu.concatenate %37, %38, %39, %40 in 0 : vector<1x16x8xf32>, vector<1x16x8xf32>, vector<1x16x8xf32>, vector<1x16x8xf32> -> vector<4x16x8xf32>
    %42 = vector.extract_strided_slice %31 {offsets = [0, 32], sizes = [16, 32], strides = [1, 1]} : vector<16x96xf32> to vector<16x32xf32>
    %43 = vector.extract_strided_slice %42 {offsets = [0, 0], sizes = [16, 8], strides = [1, 1]} : vector<16x32xf32> to vector<16x8xf32>
    %44 = vector.extract_strided_slice %42 {offsets = [0, 8], sizes = [16, 8], strides = [1, 1]} : vector<16x32xf32> to vector<16x8xf32>
    %45 = vector.extract_strided_slice %42 {offsets = [0, 16], sizes = [16, 8], strides = [1, 1]} : vector<16x32xf32> to vector<16x8xf32>
    %46 = vector.extract_strided_slice %42 {offsets = [0, 24], sizes = [16, 8], strides = [1, 1]} : vector<16x32xf32> to vector<16x8xf32>
    %47 = vector.shape_cast %43 : vector<16x8xf32> to vector<1x16x8xf32>
    %48 = vector.shape_cast %44 : vector<16x8xf32> to vector<1x16x8xf32>
    %49 = vector.shape_cast %45 : vector<16x8xf32> to vector<1x16x8xf32>
    %50 = vector.shape_cast %46 : vector<16x8xf32> to vector<1x16x8xf32>
    %51 = tpu.concatenate %47, %48, %49, %50 in 0 : vector<1x16x8xf32>, vector<1x16x8xf32>, vector<1x16x8xf32>, vector<1x16x8xf32> -> vector<4x16x8xf32>
    %52 = vector.extract_strided_slice %31 {offsets = [0, 64], sizes = [16, 32], strides = [1, 1]} : vector<16x96xf32> to vector<16x32xf32>
    %53 = vector.extract_strided_slice %52 {offsets = [0, 0], sizes = [16, 8], strides = [1, 1]} : vector<16x32xf32> to vector<16x8xf32>
    %54 = vector.extract_strided_slice %52 {offsets = [0, 8], sizes = [16, 8], strides = [1, 1]} : vector<16x32xf32> to vector<16x8xf32>
    %55 = vector.extract_strided_slice %52 {offsets = [0, 16], sizes = [16, 8], strides = [1, 1]} : vector<16x32xf32> to vector<16x8xf32>
    %56 = vector.extract_strided_slice %52 {offsets = [0, 24], sizes = [16, 8], strides = [1, 1]} : vector<16x32xf32> to vector<16x8xf32>
    %57 = vector.shape_cast %53 : vector<16x8xf32> to vector<1x16x8xf32>
    %58 = vector.shape_cast %54 : vector<16x8xf32> to vector<1x16x8xf32>
    %59 = vector.shape_cast %55 : vector<16x8xf32> to vector<1x16x8xf32>
    %60 = vector.shape_cast %56 : vector<16x8xf32> to vector<1x16x8xf32>
    %61 = tpu.concatenate %57, %58, %59, %60 in 0 : vector<1x16x8xf32>, vector<1x16x8xf32>, vector<1x16x8xf32>, vector<1x16x8xf32> -> vector<4x16x8xf32>
    %62 = vector.extract_strided_slice %41 {offsets = [0, 0, 0], sizes = [4, 8, 8], strides = [1, 1, 1]} : vector<4x16x8xf32> to vector<4x8x8xf32>
    %63 = vector.extract_strided_slice %51 {offsets = [0, 0, 0], sizes = [4, 8, 8], strides = [1, 1, 1]} : vector<4x16x8xf32> to vector<4x8x8xf32>
    %64 = vector.extract_strided_slice %61 {offsets = [0, 0, 0], sizes = [4, 8, 8], strides = [1, 1, 1]} : vector<4x16x8xf32> to vector<4x8x8xf32>
    "tpu.trace_start"() <{level = 10 : i32, message = "hqd,hkd->hqk"}> : () -> ()
    %cst_13 = arith.constant dense<0.000000e+00> : vector<4x8x8xf32>
    %65 = tpu.matmul %62, %63, %cst_13 {dimension_numbers = #tpu.dot_dimension_numbers<[2], [2], [1], [1], [0, 0, 0, 1, 1, 1], [0], [0]>} : vector<4x8x8xf32>, vector<4x8x8xf32>, vector<4x8x8xf32> -> vector<4x8x8xf32>
    "tpu.trace_stop"() : () -> ()
    %c0_14 = arith.constant 0 : index
    %c0_15 = arith.constant 0 : index
    %c0_16 = arith.constant 0 : index
    %66 = vector.load %arg2[%c0_14, %c0_15, %c0_16] : memref<2x8x8xf32, #tpu.memory_space<vmem>>, vector<1x8x8xf32>
    %67 = vector.shape_cast %66 : vector<1x8x8xf32> to vector<8x8xf32>
    %68 = vector.shape_cast %67 : vector<8x8xf32> to vector<1x8x8xf32>
    %69 = vector.broadcast %68 : vector<1x8x8xf32> to vector<4x8x8xf32>
    %70 = arith.addf %65, %69 : vector<4x8x8xf32>
    %cst_17 = arith.constant dense<0xFF800000> : vector<4x8xf32>
    %71 = vector.multi_reduction <maximumf>, %70, %cst_17 [2] : vector<4x8x8xf32> to vector<4x8xf32>
    %72 = vector.shape_cast %71 : vector<4x8xf32> to vector<4x8x1xf32>
    %73 = vector.broadcast %72 : vector<4x8x1xf32> to vector<4x8x8xf32>
    %74 = arith.subf %70, %73 : vector<4x8x8xf32>
    %75 = math.exp %74 : vector<4x8x8xf32>
    %cst_18 = arith.constant dense<0.000000e+00> : vector<4x8xf32>
    %76 = vector.multi_reduction <add>, %75, %cst_18 [2] : vector<4x8x8xf32> to vector<4x8xf32>
    %77 = vector.shape_cast %76 : vector<4x8xf32> to vector<4x8x1xf32>
    %78 = tpu.reciprocal %77 {approx = true} : vector<4x8x1xf32> -> vector<4x8x1xf32>
    %79 = vector.broadcast %78 : vector<4x8x1xf32> to vector<4x8x8xf32>
    %80 = arith.mulf %75, %79 : vector<4x8x8xf32>
    "tpu.trace_start"() <{level = 10 : i32, message = "hqk,hkd->hqd"}> : () -> ()
    %cst_19 = arith.constant dense<0.000000e+00> : vector<4x8x8xf32>
    %81 = tpu.matmul %80, %64, %cst_19 {dimension_numbers = #tpu.dot_dimension_numbers<[2], [1], [1], [2], [0, 0, 0, 1, 1, 2], [0], [0]>} : vector<4x8x8xf32>, vector<4x8x8xf32>, vector<4x8x8xf32> -> vector<4x8x8xf32>
    "tpu.trace_stop"() : () -> ()
    %c0_20 = arith.constant 0 : index
    %c0_21 = arith.constant 0 : index
    %c0_22 = arith.constant 0 : index
    %82 = vector.load %arg6[%c0_20, %c0_21, %c0_22] : memref<4x8x32xf32, #tpu.memory_space<vmem>>, vector<4x8x32xf32>
    "tpu.trace_start"() <{level = 10 : i32, message = "hqd,hdn->hqn"}> : () -> ()
    %cst_23 = arith.constant dense<0.000000e+00> : vector<4x8x32xf32>
    %83 = tpu.matmul %81, %82, %cst_23 {dimension_numbers = #tpu.dot_dimension_numbers<[2], [1], [1], [2], [0, 0, 0, 1, 1, 2], [0], [0]>} : vector<4x8x8xf32>, vector<4x8x32xf32>, vector<4x8x32xf32> -> vector<4x8x32xf32>
    "tpu.trace_stop"() : () -> ()
    %cst_24 = arith.constant dense<0.000000e+00> : vector<8x32xf32>
    %84 = vector.multi_reduction <add>, %83, %cst_24 [0] : vector<4x8x32xf32> to vector<8x32xf32>
    %85 = vector.extract_strided_slice %41 {offsets = [0, 8, 0], sizes = [4, 8, 8], strides = [1, 1, 1]} : vector<4x16x8xf32> to vector<4x8x8xf32>
    %86 = vector.extract_strided_slice %51 {offsets = [0, 8, 0], sizes = [4, 8, 8], strides = [1, 1, 1]} : vector<4x16x8xf32> to vector<4x8x8xf32>
    %87 = vector.extract_strided_slice %61 {offsets = [0, 8, 0], sizes = [4, 8, 8], strides = [1, 1, 1]} : vector<4x16x8xf32> to vector<4x8x8xf32>
    "tpu.trace_start"() <{level = 10 : i32, message = "hqd,hkd->hqk"}> : () -> ()
    %cst_25 = arith.constant dense<0.000000e+00> : vector<4x8x8xf32>
    %88 = tpu.matmul %85, %86, %cst_25 {dimension_numbers = #tpu.dot_dimension_numbers<[2], [2], [1], [1], [0, 0, 0, 1, 1, 1], [0], [0]>} : vector<4x8x8xf32>, vector<4x8x8xf32>, vector<4x8x8xf32> -> vector<4x8x8xf32>
    "tpu.trace_stop"() : () -> ()
    %c1 = arith.constant 1 : index
    %c0_26 = arith.constant 0 : index
    %c0_27 = arith.constant 0 : index
    %89 = vector.load %arg2[%c1, %c0_26, %c0_27] : memref<2x8x8xf32, #tpu.memory_space<vmem>>, vector<1x8x8xf32>
    %90 = vector.shape_cast %89 : vector<1x8x8xf32> to vector<8x8xf32>
    %91 = vector.shape_cast %90 : vector<8x8xf32> to vector<1x8x8xf32>
    %92 = vector.broadcast %91 : vector<1x8x8xf32> to vector<4x8x8xf32>
    %93 = arith.addf %88, %92 : vector<4x8x8xf32>
    %cst_28 = arith.constant dense<0xFF800000> : vector<4x8xf32>
    %94 = vector.multi_reduction <maximumf>, %93, %cst_28 [2] : vector<4x8x8xf32> to vector<4x8xf32>
    %95 = vector.shape_cast %94 : vector<4x8xf32> to vector<4x8x1xf32>
    %96 = vector.broadcast %95 : vector<4x8x1xf32> to vector<4x8x8xf32>
    %97 = arith.subf %93, %96 : vector<4x8x8xf32>
    %98 = math.exp %97 : vector<4x8x8xf32>
    %cst_29 = arith.constant dense<0.000000e+00> : vector<4x8xf32>
    %99 = vector.multi_reduction <add>, %98, %cst_29 [2] : vector<4x8x8xf32> to vector<4x8xf32>
    %100 = vector.shape_cast %99 : vector<4x8xf32> to vector<4x8x1xf32>
    %101 = tpu.reciprocal %100 {approx = true} : vector<4x8x1xf32> -> vector<4x8x1xf32>
    %102 = vector.broadcast %101 : vector<4x8x1xf32> to vector<4x8x8xf32>
    %103 = arith.mulf %98, %102 : vector<4x8x8xf32>
    "tpu.trace_start"() <{level = 10 : i32, message = "hqk,hkd->hqd"}> : () -> ()
    %cst_30 = arith.constant dense<0.000000e+00> : vector<4x8x8xf32>
    %104 = tpu.matmul %103, %87, %cst_30 {dimension_numbers = #tpu.dot_dimension_numbers<[2], [1], [1], [2], [0, 0, 0, 1, 1, 2], [0], [0]>} : vector<4x8x8xf32>, vector<4x8x8xf32>, vector<4x8x8xf32> -> vector<4x8x8xf32>
    "tpu.trace_stop"() : () -> ()
    %c0_31 = arith.constant 0 : index
    %c0_32 = arith.constant 0 : index
    %c0_33 = arith.constant 0 : index
    %105 = vector.load %arg6[%c0_31, %c0_32, %c0_33] : memref<4x8x32xf32, #tpu.memory_space<vmem>>, vector<4x8x32xf32>
    "tpu.trace_start"() <{level = 10 : i32, message = "hqd,hdn->hqn"}> : () -> ()
    %cst_34 = arith.constant dense<0.000000e+00> : vector<4x8x32xf32>
    %106 = tpu.matmul %104, %105, %cst_34 {dimension_numbers = #tpu.dot_dimension_numbers<[2], [1], [1], [2], [0, 0, 0, 1, 1, 2], [0], [0]>} : vector<4x8x8xf32>, vector<4x8x32xf32>, vector<4x8x32xf32> -> vector<4x8x32xf32>
    "tpu.trace_stop"() : () -> ()
    %cst_35 = arith.constant dense<0.000000e+00> : vector<8x32xf32>
    %107 = vector.multi_reduction <add>, %106, %cst_35 [0] : vector<4x8x32xf32> to vector<8x32xf32>
    %108 = tpu.concatenate %84, %107 in 0 : vector<8x32xf32>, vector<8x32xf32> -> vector<16x32xf32>
    %109 = arith.addf %1, %108 : vector<16x32xf32>
    %c0_36 = arith.constant 0 : index
    %c0_37 = arith.constant 0 : index
    %110 = vector.load %arg7[%c0_36, %c0_37] : memref<1x32xf32, #tpu.memory_space<vmem>>, vector<1x32xf32>
    %111 = vector.broadcast %110 : vector<1x32xf32> to vector<16x32xf32>
    %112 = arith.addf %109, %111 : vector<16x32xf32>
    %113 = vector.extract_strided_slice %2 {offsets = [2, 0], sizes = [1, 32], strides = [1, 1]} : vector<4x32xf32> to vector<1x32xf32>
    %114 = vector.extract_strided_slice %2 {offsets = [3, 0], sizes = [1, 32], strides = [1, 1]} : vector<4x32xf32> to vector<1x32xf32>
    %cst_38 = arith.constant dense<0.000000e+00> : vector<16xf32>
    %115 = vector.multi_reduction <add>, %112, %cst_38 [1] : vector<16x32xf32> to vector<16xf32>
    %116 = vector.shape_cast %115 : vector<16xf32> to vector<16x1xf32>
    %cst_39 = arith.constant 3.200000e+01 : f32
    %117 = vector.broadcast %cst_39 : f32 to vector<16x1xf32>
    %118 = arith.divf %116, %117 : vector<16x1xf32>
    %119 = vector.broadcast %118 : vector<16x1xf32> to vector<16x32xf32>
    %120 = arith.subf %112, %119 : vector<16x32xf32>
    %121 = arith.mulf %120, %120 : vector<16x32xf32>
    %cst_40 = arith.constant dense<0.000000e+00> : vector<16xf32>
    %122 = vector.multi_reduction <add>, %121, %cst_40 [1] : vector<16x32xf32> to vector<16xf32>
    %123 = vector.shape_cast %122 : vector<16xf32> to vector<16x1xf32>
    %cst_41 = arith.constant 3.200000e+01 : f32
    %124 = vector.broadcast %cst_41 : f32 to vector<16x1xf32>
    %125 = arith.divf %123, %124 : vector<16x1xf32>
    %126 = vector.broadcast %118 : vector<16x1xf32> to vector<16x32xf32>
    %127 = arith.subf %112, %126 : vector<16x32xf32>
    %cst_42 = arith.constant 9.99999974E-6 : f32
    %128 = vector.broadcast %cst_42 : f32 to vector<16x1xf32>
    %129 = arith.addf %125, %128 : vector<16x1xf32>
    %130 = math.rsqrt %129 : vector<16x1xf32>
    %131 = vector.broadcast %130 : vector<16x1xf32> to vector<16x32xf32>
    %132 = arith.mulf %127, %131 : vector<16x32xf32>
    %133 = vector.broadcast %113 : vector<1x32xf32> to vector<16x32xf32>
    %134 = arith.mulf %132, %133 : vector<16x32xf32>
    %135 = vector.broadcast %114 : vector<1x32xf32> to vector<16x32xf32>
    %136 = arith.addf %134, %135 : vector<16x32xf32>
    %c0_43 = arith.constant 0 : index
    %c0_44 = arith.constant 0 : index
    %137 = vector.load %arg8[%c0_43, %c0_44] : memref<32x64xf32, #tpu.memory_space<vmem>>, vector<32x64xf32>
    %cst_45 = arith.constant dense<0.000000e+00> : vector<16x64xf32>
    %138 = tpu.matmul %136, %137, %cst_45 {dimension_numbers = #tpu.dot_dimension_numbers<[1], [0], [0], [1], [0, 0, 1, 1], [], []>} : vector<16x32xf32>, vector<32x64xf32>, vector<16x64xf32> -> vector<16x64xf32>
    %c0_46 = arith.constant 0 : index
    %c0_47 = arith.constant 0 : index
    %139 = vector.load %arg9[%c0_46, %c0_47] : memref<1x64xf32, #tpu.memory_space<vmem>>, vector<1x64xf32>
    %140 = vector.broadcast %139 : vector<1x64xf32> to vector<16x64xf32>
    %141 = arith.addf %138, %140 : vector<16x64xf32>
    %cst_48 = arith.constant 0.000000e+00 : f32
    %142 = vector.broadcast %cst_48 : f32 to vector<16x64xf32>
    %143 = arith.maximumf %141, %142 : vector<16x64xf32>
    %c0_49 = arith.constant 0 : index
    %c0_50 = arith.constant 0 : index
    %144 = vector.load %arg10[%c0_49, %c0_50] : memref<64x32xf32, #tpu.memory_space<vmem>>, vector<64x32xf32>
    %cst_51 = arith.constant dense<0.000000e+00> : vector<16x32xf32>
    %145 = tpu.matmul %143, %144, %cst_51 {dimension_numbers = #tpu.dot_dimension_numbers<[1], [0], [0], [1], [0, 0, 1, 1], [], []>} : vector<16x64xf32>, vector<64x32xf32>, vector<16x32xf32> -> vector<16x32xf32>
    %146 = arith.addf %112, %145 : vector<16x32xf32>
    %c0_52 = arith.constant 0 : index
    %c0_53 = arith.constant 0 : index
    %147 = vector.load %arg11[%c0_52, %c0_53] : memref<1x32xf32, #tpu.memory_space<vmem>>, vector<1x32xf32>
    %148 = vector.broadcast %147 : vector<1x32xf32> to vector<16x32xf32>
    %149 = arith.addf %146, %148 : vector<16x32xf32>
    %150 = vector.shape_cast %149 : vector<16x32xf32> to vector<2x8x32xf32>
    %c0_54 = arith.constant 0 : index
    %c0_55 = arith.constant 0 : index
    %c0_56 = arith.constant 0 : index
    %151 = vector.load %arg12[%c0_54, %c0_55, %c0_56] : memref<2x8x32xf32, #tpu.memory_space<vmem>>, vector<2x8x32xf32>
    tpu.vector_store %arg12[%c0_54, %c0_55, %c0_56], %150 {strides = array<i32>} : memref<2x8x32xf32, #tpu.memory_space<vmem>>, vector<2x8x32xf32>,
    return
  }
  func.func @transform_0(%arg0: i32) -> (i32, i32, i32) {
    %c0_i32 = arith.constant 0 : i32
    %c0_i32_0 = arith.constant 0 : i32
    %c0_i32_1 = arith.constant 0 : i32
    %c0_i32_2 = arith.constant 0 : i32
    return %c0_i32, %c0_i32_0, %c0_i32_1 : i32, i32, i32
  }
  func.func @transform_1(%arg0: i32) -> (i32, i32, i32) {
    %c0_i32 = arith.constant 0 : i32
    %c0_i32_0 = arith.constant 0 : i32
    %c0_i32_1 = arith.constant 0 : i32
    %c0_i32_2 = arith.constant 0 : i32
    return %c0_i32, %c0_i32_0, %c0_i32_1 : i32, i32, i32
  }
  func.func @transform_2(%arg0: i32) -> (i32, i32) {
    %c0_i32 = arith.constant 0 : i32
    %c0_i32_0 = arith.constant 0 : i32
    %c0_i32_1 = arith.constant 0 : i32
    return %c0_i32, %c0_i32_0 : i32, i32
  }
  func.func @transform_3(%arg0: i32) -> (i32, i32) {
    %c0_i32 = arith.constant 0 : i32
    %c0_i32_0 = arith.constant 0 : i32
    %c0_i32_1 = arith.constant 0 : i32
    return %c0_i32, %c0_i32_0 : i32, i32
  }
  func.func @transform_4(%arg0: i32) -> (i32, i32) {
    %c0_i32 = arith.constant 0 : i32
    %c0_i32_0 = arith.constant 0 : i32
    %c0_i32_1 = arith.constant 0 : i32
    return %c0_i32, %c0_i32_0 : i32, i32
  }
  func.func @transform_5(%arg0: i32) -> (i32, i32, i32) {
    %c0_i32 = arith.constant 0 : i32
    %c0_i32_0 = arith.constant 0 : i32
    %c0_i32_1 = arith.constant 0 : i32
    %c0_i32_2 = arith.constant 0 : i32
    return %c0_i32, %c0_i32_0, %c0_i32_1 : i32, i32, i32
  }
  func.func @transform_6(%arg0: i32) -> (i32, i32) {
    %c0_i32 = arith.constant 0 : i32
    %c0_i32_0 = arith.constant 0 : i32
    %c0_i32_1 = arith.constant 0 : i32
    return %c0_i32, %c0_i32_0 : i32, i32
  }
  func.func @transform_7(%arg0: i32) -> (i32, i32) {
    %c0_i32 = arith.constant 0 : i32
    %c0_i32_0 = arith.constant 0 : i32
    %c0_i32_1 = arith.constant 0 : i32
    return %c0_i32, %c0_i32_0 : i32, i32
  }
  func.func @transform_8(%arg0: i32) -> (i32, i32) {
    %c0_i32 = arith.constant 0 : i32
    %c0_i32_0 = arith.constant 0 : i32
    %c0_i32_1 = arith.constant 0 : i32
    return %c0_i32, %c0_i32_0 : i32, i32
  }
  func.func @transform_9(%arg0: i32) -> (i32, i32) {
    %c0_i32 = arith.constant 0 : i32
    %c0_i32_0 = arith.constant 0 : i32
    %c0_i32_1 = arith.constant 0 : i32
    return %c0_i32, %c0_i32_0 : i32, i32
  }
  func.func @transform_10(%arg0: i32) -> (i32, i32) {
    %c0_i32 = arith.constant 0 : i32
    %c0_i32_0 = arith.constant 0 : i32
    %c0_i32_1 = arith.constant 0 : i32
    return %c0_i32, %c0_i32_0 : i32, i32
  }
  func.func @transform_11(%arg0: i32) -> (i32, i32, i32) {
    %c0_i32 = arith.constant 0 : i32
    %c0_i32_0 = arith.constant 0 : i32
    %c0_i32_1 = arith.constant 0 : i32
    %c0_i32_2 = arith.constant 0 : i32
    return %c0_i32, %c0_i32_0, %c0_i32_1 : i32, i32, i32
  }
}

</mosaic_0001>

<bundles_post_ra>
// kernel: encoder_block.1
= control target key start
LH: loop header
LB: loop body
LE: loop exit
PB: predicated region body
PF: predicated region fallthrough
CT: control target
= control target key end

     0   :  { %vm42_vm0 = vcmask 261120   ;;  %s1509_s0 = inlined_call_operand.vmem [shape: f32[2,8,32], index: 0, kind: input, shape index: {}]   ;;  %s1510_s1 = inlined_call_operand.vmem [shape: f32[2,8,8], index: 1, kind: input, shape index: {}]   ;;  %s1511_s2 = inlined_call_operand.vmem [shape: f32[4,32], index: 2, kind: input, shape index: {}]   ;;  %s1512_s3 = inlined_call_operand.vmem [shape: f32[32,96], index: 3, kind: input, shape index: {}]   ;;  %s1513_s4 = inlined_call_operand.vmem [shape: f32[1,96], index: 4, kind: input, shape index: {}]   ;;  %s1514_s5 = inlined_call_operand.vmem [shape: f32[4,8,32], index: 5, kind: input, shape index: {}]   ;;  %s1515_s6 = inlined_call_operand.vmem [shape: f32[1,32], index: 6, kind: input, shape index: {}]   ;;  %s1516_s7 = inlined_call_operand.vmem [shape: f32[32,64], index: 7, kind: input, shape index: {}]   ;;  %s1517_s8 = inlined_call_operand.vmem [shape: f32[1,64], index: 8, kind: input, shape index: {}]   ;;  %s1518_s9 = inlined_call_operand.vmem [shape: f32[64,32], index: 9, kind: input, shape index: {}]   ;;  %s1519_s10 = inlined_call_operand.vmem [shape: f32[1,32], index: 10, kind: input, shape index: {}]   ;;  %s1520_s11 = inlined_call_operand.hbm [shape: f32[2,8,32], index: 11, kind: output, shape index: {}]  }
   0x1   :  { %v1239_v0 = vld [vmem:[%s1509_s0] sm:$0xff]  ;;  %v1244_v1 = vld [vmem:[%s1509_s0 + $0x8] sm:$0xff] }
   0x2   :  { %v43_v2 = vsel %vm42_vm0, %v1239_v0, 0.0  ;;  %v46_v3 = vsel %vm42_vm0, %v1244_v1, 0.0 }
   0x3   :  { %44 = vadd.xlane.f32.xlu0 %v43_v2  ;;  %47 = vadd.xlane.f32.xlu1 %v46_v3 }
   0x4   :  { %16 = vsyncpa [#allocation3], 0  ;;  %v1167_v4 = vmov 32.0   ;;  %v103_v21 = vld [vmem:[%s1512_s3 + $0x18] sm:$0xff]  ;;  %v102_v22 = vld [vmem:[%s1512_s3 + $0x10] sm:$0xff]  ;;  %s1168_s30 = smov 112  }
   0x5   :  { %1099 = vrcp.f32 %v1167_v4  ;;  %126 = vmatpush.msra.mxu0 %v103_v21  ;;  %1067 = vmatpush.msra.mxu1 %v103_v21  ;;  %v101_v23 = vld [vmem:[%s1512_s3 + $0x8] sm:$0xff]  ;;  %v100_v24 = vld [vmem:[%s1512_s3] sm:$0xff]  ;;  %s1169_s12 = smov 104   ;;  %s1170_s13 = smov 120   ;;  %vm154_vm8 = vcmask 64512   ;;  %vm970_vm12 = vcmask 523264  }
   0x6   :  { %v1275_v40 = vld [vmem:[%s1511_s2] sm:$0xf]  ;;  %s1171_s14 = smov 96   ;;  %s1172_s16 = smov 64  }
   0x7   :  { %127 = vmatpush.msra.mxu0 %v102_v22  ;;  %1068 = vmatpush.msra.mxu1 %v102_v22  ;;  %v94_v43 = vperm.slane %v1275_v40, 0  ;;  %v97_v47 = vperm.slane %v1275_v40, 1  ;;  %v1095_v54 = vld [vmem:[%s1513_s4] ss:$0 sm:$0xff]  ;;  %s1016_s27 = sshll.u32 %s1520_s11, 4  ;;  %s1174_s3 = smov 128   ;;  %s1017_s27 = int_to_ptr.hbm [resolvable:$true] %s1016_s27 }
   0x8   :  { %v151_v3 = vld [vmem:[%s1510_s1] sm:$0xff]  ;;  %s1175_s28 = smov 8  }
   0x9   :  { %128 = vmatpush.msra.mxu0 %v101_v23  ;;  %1069 = vmatpush.msra.mxu1 %v101_v23 }
   0xb   :  { %v1100_v5 = vpop.eup %1099  ;;  %129 = vmatpush.msra.mxu0 %v100_v24  ;;  %1070 = vmatpush.msra.mxu1 %v100_v24 }
   0xc   :  { %v50_v6 = vmul.f32 32.0, %v1100_v5  ;;  %vm54_vm1 = vweird.f32 %v1100_v5 }
   0xe   :  { %v51_v7 = vsub.f32 1.0, %v50_v6 }
  0x10   :  { %v52_v8 = vmul.f32 %v1100_v5, %v51_v7 }
  0x12   :  { %v53_v9 = vadd.f32 %v1100_v5, %v52_v8 }
  0x14   :  { %v1250_v10 = vsel %vm54_vm1, %v1100_v5, %v53_v9 }
  0x76   :  { %v45_v11 = vpop.xlane.xlu0 %44  ;;  %v48_v12 = vpop.xlane.xlu1 %47 }
  0x77   :  { %v56_v13 = vmul.f32 %v1250_v10, %v45_v11  ;;  %v57_v14 = vmul.f32 %v1250_v10, %v48_v12 }
  0x79   :  { %v58_v15 = vsub.f32 %v1239_v0, %v56_v13  ;;  %v59_v16 = vsub.f32 %v1244_v1, %v57_v14 }
  0x7b   :  { %v60_v17 = vmul.f32 %v58_v15, %v58_v15  ;;  %v61_v18 = vmul.f32 %v59_v16, %v59_v16 }
  0x7d   :  { %v62_v19 = vsel %vm42_vm0, %v60_v17, 0.0  ;;  %v65_v20 = vsel %vm42_vm0, %v61_v18, 0.0 }
  0x7e   :  { %63 = vadd.xlane.f32.xlu0 %v62_v19  ;;  %66 = vadd.xlane.f32.xlu2 %v65_v20 }
  0xf1   :  { %v64_v25 = vpop.xlane.xlu0 %63  ;;  %v67_v26 = vpop.xlane.xlu2 %66 }
  0xf2   :  { %v68_v27 = vmul.f32 %v64_v25, %v1250_v10  ;;  %v69_v28 = vmul.f32 %v67_v26, %v1250_v10 }
  0xf4   :  { %v70_v29 = vadd.f32 1e-05, %v68_v27  ;;  %v71_v30 = vadd.f32 1e-05, %v69_v28 }
  0xf6   :  { %1101 = vrsqrt.f32 %v70_v29  ;;  %vm88_vm2 = vweird.f32 %v71_v30  ;;  %vm78_vm5 = vweird.f32 %v70_v29 }
  0xf7   :  { %1103 = vrsqrt.f32 %v71_v30 }
  0xfc   :  { %v1102_v31 = vpop.eup %1101 }
  0xfd   :  { %v1104_v32 = vpop.eup %1103  ;;  %v73_v33 = vmul.f32 %v1102_v31, %v70_v29  ;;  %vm79_vm4 = vweird.f32 %v1102_v31 }
  0xfe   :  { %v83_v34 = vmul.f32 %v1104_v32, %v71_v30  ;;  %vm89_vm3 = vweird.f32 %v1104_v32  ;;  %vm80_vm7 = vmor %vm78_vm5, %vm79_vm4 }
  0xff   :  { %v74_v35 = vmul.f32 %v1102_v31, %v73_v33  ;;  %vm90_vm6 = vmor %vm88_vm2, %vm89_vm3 }
 0x100   :  { %v84_v36 = vmul.f32 %v1104_v32, %v83_v34 }
 0x101   :  { %v75_v37 = vmul.f32 0.5, %v74_v35 }
 0x102   :  { %v85_v38 = vmul.f32 0.5, %v84_v36 }
 0x103   :  { %v76_v39 = vsub.f32 1.5, %v75_v37 }
 0x104   :  { %v86_v41 = vsub.f32 1.5, %v85_v38 }
 0x105   :  { %v77_v42 = vmul.f32 %v1102_v31, %v76_v39 }
 0x106   :  { %v87_v44 = vmul.f32 %v1104_v32, %v86_v41 }
 0x107   :  { %v81_v45 = vsel %vm80_vm7, %v1102_v31, %v77_v42 }
 0x108   :  { %v92_v46 = vmul.f32 %v81_v45, %v58_v15  ;;  %v91_v48 = vsel %vm90_vm6, %v1104_v32, %v87_v44 }
 0x109   :  { %v93_v49 = vmul.f32 %v91_v48, %v59_v16  ;;  %v1345_v48 = vld [vmem:[%s1514_s5] sm:$0xff] }
 0x10a   :  { %v95_v50 = vmul.f32 %v94_v43, %v92_v46 }
 0x10b   :  { %v96_v51 = vmul.f32 %v94_v43, %v93_v49 }
 0x10c   :  { %v98_v52 = vadd.f32 %v97_v47, %v95_v50 }
 0x10d   :  { %v99_v53 = vadd.f32 %v97_v47, %v96_v51 }
 0x10e   :  { %1028 = vmatmul.msk.f32.vlgmr.msra.gmra.mxu0 %vm42_vm0, %v98_v52 }
 0x10f   :  { %1029 = vmatmul.msk.f32.vlgmr.msra.gmra.mxu1 %vm42_vm0, %v99_v53 }
 0x18b   :  { %v131_v55 = vpop.f32.mrf.mxu0 }
 0x18c   :  { %v132_v56 = vadd.f32 %v1095_v54, %v131_v55  ;;  %v134_v2 = vpop.f32.mrf.mxu1 }
 0x18d   :  { %v1316_v23 = vadd.f32 %v1095_v54, %v134_v2 }
 0x18e   :  { %143 = vrot.lane.b32.xlu0 %v132_v56, %s1168_s30  ;;  %147 = vrot.lane.b32.xlu2 %v132_v56, %s1169_s12 }
 0x18f   :  { %139 = vrot.lane.b32.xlu1 %v132_v56, %s1170_s13 }
 0x197   :  { %152 = vrot.lane.b32.xlu1 %v132_v56, %s1171_s14 }
 0x1e8   :  { %v1288_v57 = vpop.permute.xlu2 %147 }
 0x1e9   :  { %231 = vrot.lane.b32.xlu0 %v1288_v57, %s1171_s14 }
 0x200   :  { %v1293_v59 = vpop.permute.xlu0 %143 }
 0x201   :  { %v140_v58 = vpop.permute.xlu1 %139 }
 0x202   :  { %179 = vrot.lane.b32.xlu2 %v140_v58, %s1171_s14  ;;  %v1080_v22 = vpack.i.bf16 %v140_v58, %v132_v56 }
 0x209   :  { %v153_v60 = vpop.permute.xlu1 %152 }
 0x20a   :  { %1030 = vmatpush.xpose.msk.msrb.mxu1 %vm154_vm8, %v153_v60  ;;  %205 = vrot.lane.b32.xlu2 %v1293_v59, %s1171_s14 }
 0x20d   :  { %1031 = vmatmul.msk.f32.vlgmr.msrb.gmra.mxu1 %vm154_vm8, %v132_v56 }
 0x25b   :  { %v232_v61 = vpop.permute.xlu0 %231 }
 0x25c   :  { %v180_v62 = vpop.permute.xlu2 %179  ;;  %1036 = vmatpush.xpose.msk.msra.mxu1 %vm154_vm8, %v232_v61 }
 0x25d   :  { %1032 = vmatpush.xpose.msk.msra.mxu2 %vm154_vm8, %v180_v62  ;;  %v1358_v62 = vld [vmem:[%s1514_s5 + $0x10] sm:$0xff] }
 0x25f   :  { %1037 = vmatmul.msk.f32.vlgmr.msra.gmra.mxu1 %vm154_vm8, %v1288_v57 }
 0x260   :  { %1033 = vmatmul.msk.f32.vlgmr.msra.gmra.mxu2 %vm154_vm8, %v140_v58 }
 0x264   :  { %v206_v63 = vpop.permute.xlu2 %205 }
 0x265   :  { %1034 = vmatpush.xpose.msk.msra.mxu3 %vm154_vm8, %v206_v63 }
 0x268   :  { %1035 = vmatmul.msk.f32.vlgmr.msra.gmra.mxu3 %vm154_vm8, %v1293_v59 }
 0x28a   :  { %v176_v4 = vpop.f32.mrf.mxu1 }
 0x28b   :  { %v177_v5 = vadd.f32 %v176_v4, %v151_v3  ;;  %v1375_v4 = vld [vmem:[%s1514_s5 + $0x18] sm:$0xff] }
 0x28d   :  { %v257_v6 = vsel %vm154_vm8, %v177_v5, -inf }
 0x28e   :  { %258 = vmax.xlane.f32.xlu1 %v257_v6 }
 0x2dc   :  { %v254_v7 = vpop.f32.mrf.mxu1 }
 0x2dd   :  { %v255_v8 = vadd.f32 %v254_v7, %v151_v3 }
 0x2df   :  { %v266_v9 = vsel %vm154_vm8, %v255_v8, -inf }
 0x2e0   :  { %267 = vmax.xlane.f32.xlu2 %v266_v9 }
 0x2e3   :  { %v202_v11 = vpop.f32.mrf.mxu2 }
 0x2e4   :  { %v203_v12 = vadd.f32 %v202_v11, %v151_v3 }
 0x2e6   :  { %v260_v13 = vsel %vm154_vm8, %v203_v12, -inf }
 0x2e7   :  { %261 = vmax.xlane.f32.xlu0 %v260_v13 }
 0x2eb   :  { %v228_v14 = vpop.f32.mrf.mxu3 }
 0x2ec   :  { %v229_v15 = vadd.f32 %v228_v14, %v151_v3  ;;  %v1369_v3 = vld [vmem:[%s1514_s5 + $0x8] sm:$0xff] }
 0x2ee   :  { %v263_v16 = vsel %vm154_vm8, %v229_v15, -inf }
 0x2ef   :  { %264 = vmax.xlane.f32.xlu1 %v263_v16 }
 0x301   :  { %v259_v17 = vpop.xlane.xlu1 %258 }
 0x302   :  { %v269_v18 = vsub.f32 %v177_v5, %v259_v17 }
 0x304   :  { %v273_v19 = vmul.f32 1.442695, %v269_v18 }
 0x306   :  { %1105 = vpow2.f32 %v273_v19 }
 0x30c   :  { %v1106_v20 = vpop.eup %1105 }
 0x30d   :  { %v281_v21 = vsel %vm154_vm8, %v1106_v20, 0.0 }
 0x30e   :  { %282 = vadd.xlane.f32.xlu0 %v281_v21 }
 0x322   :  { %1081 = vrot.lane.b32.xlu0 %v1080_v22, %s1172_s16 }
 0x32a   :  { %149 = vrot.lane.b32.xlu0 %v1316_v23, %s1169_s12 }
 0x332   :  { %145 = vrot.lane.b32.xlu0 %v1316_v23, %s1168_s30 }
 0x353   :  { %v268_v24 = vpop.xlane.xlu2 %267 }
 0x354   :  { %v272_v25 = vsub.f32 %v255_v8, %v268_v24 }
 0x356   :  { %v279_v26 = vmul.f32 1.442695, %v272_v25 }
 0x358   :  { %1107 = vpow2.f32 %v279_v26 }
 0x35a   :  { %v262_v27 = vpop.xlane.xlu0 %261 }
 0x35b   :  { %v270_v28 = vsub.f32 %v203_v12, %v262_v27  ;;  %v1046_v12 = vld [vmem:[%s1510_s1 + $0x8] sm:$0xff] }
 0x35d   :  { %v275_v29 = vmul.f32 1.442695, %v270_v28 }
 0x35e   :  { %v1108_v30 = vpop.eup %1107 }
 0x35f   :  { %1109 = vpow2.f32 %v275_v29  ;;  %v290_v31 = vsel %vm154_vm8, %v1108_v30, 0.0 }
 0x360   :  { %291 = vadd.xlane.f32.xlu1 %v290_v31 }
 0x362   :  { %v265_v32 = vpop.xlane.xlu1 %264 }
 0x363   :  { %v271_v33 = vsub.f32 %v229_v15, %v265_v32 }
 0x365   :  { %v1110_v34 = vpop.eup %1109  ;;  %v277_v35 = vmul.f32 1.442695, %v271_v33 }
 0x366   :  { %v284_v36 = vsel %vm154_vm8, %v1110_v34, 0.0 }
 0x367   :  { %1111 = vpow2.f32 %v277_v35  ;;  %285 = vadd.xlane.f32.xlu2 %v284_v36 }
 0x36d   :  { %v1112_v37 = vpop.eup %1111 }
 0x36e   :  { %v287_v38 = vsel %vm154_vm8, %v1112_v37, 0.0 }
 0x36f   :  { %288 = vadd.xlane.f32.xlu1 %v287_v38 }
 0x37f   :  { %379 = vrot.lane.b32.xlu2 %v1288_v57, %s1172_s16 }
 0x381   :  { %v283_v39 = vpop.xlane.xlu0 %282 }
 0x382   :  { %1113 = vrcp.f32 %v283_v39 }
 0x387   :  { %141 = vrot.lane.b32.xlu2 %v1316_v23, %s1170_s13 }
 0x388   :  { %353 = vrot.lane.b32.xlu1 %v1293_v59, %s1172_s16  ;;  %v1114_v41 = vpop.eup %1113 }
 0x389   :  { %v297_v45 = vmul.f32 %v1114_v41, %v1106_v20 }
 0x38f   :  { %510 = vrot.lane.b32.xlu2 %v1316_v23, %s1171_s14 }
 0x394   :  { %v1082_v42 = vpop.permute.xlu0 %1081 }
 0x395   :  { %v1083_v43 = vunpack.i.l.bf16 %v1082_v42  ;;  %v1084_v44 = vunpack.i.h.bf16 %v1082_v42 }
 0x397   :  { %322 = vmatpush.msrb.mxu2 %v1083_v43  ;;  %348 = vmatpush.msrb.mxu3 %v1084_v44 }
 0x398   :  { %1038 = vmatmul.msk.f32.vlgmr.msrb.gmra.mxu2 %vm154_vm8, %v297_v45 }
 0x399   :  { %427 = vmatpush.msra.mxu3 %v1345_v48 }
 0x39c   :  { %v1334_v46 = vpop.permute.xlu0 %149 }
 0x39d   :  { %588 = vrot.lane.b32.xlu0 %v1334_v46, %s1171_s14  ;;  %v1085_v36 = vpack.i.bf16 %v1334_v46, %v1316_v23 }
 0x3a4   :  { %v1338_v47 = vpop.permute.xlu0 %145 }
 0x3a5   :  { %562 = vrot.lane.b32.xlu2 %v1338_v47, %s1171_s14 }
 0x3d3   :  { %v292_v49 = vpop.xlane.xlu1 %291 }
 0x3d4   :  { %1115 = vrcp.f32 %v292_v49 }
 0x3da   :  { %v286_v50 = vpop.xlane.xlu2 %285  ;;  %v1116_v51 = vpop.eup %1115 }
 0x3db   :  { %1117 = vrcp.f32 %v286_v50  ;;  %v300_v53 = vmul.f32 %v1116_v51, %v1108_v30 }
 0x3e1   :  { %v1118_v52 = vpop.eup %1117 }
 0x3e2   :  { %v380_v54 = vpop.permute.xlu2 %379  ;;  %v298_v55 = vmul.f32 %v1118_v52, %v1110_v34  ;;  %v289_v57 = vpop.xlane.xlu1 %288 }
 0x3e3   :  { %400 = vmatpush.msra.mxu2 %v380_v54  ;;  %1119 = vrcp.f32 %v289_v57 }
 0x3e4   :  { %1039 = vmatmul.msk.f32.vlgmr.msrb.gmra.mxu3 %vm154_vm8, %v298_v55  ;;  %1041 = vmatmul.msk.f32.vlgmr.msra.gmra.mxu2 %vm154_vm8, %v300_v53 }
 0x3e5   :  { %450 = vmatpush.msrb.mxu2 %v1369_v3 }
 0x3e7   :  { %496 = vmatpush.msra.mxu2 %v1375_v4 }
 0x3e9   :  { %v1120_v59 = vpop.eup %1119 }
 0x3ea   :  { %v1350_v56 = vpop.permute.xlu2 %141  ;;  %v299_v60 = vmul.f32 %v1120_v59, %v1112_v37 }
 0x3eb   :  { %536 = vrot.lane.b32.xlu1 %v1350_v56, %s1171_s14  ;;  %v1090_v54 = vpack.i.bf16 %v1338_v47, %v1350_v56 }
 0x3f2   :  { %v511_v58 = vpop.permute.xlu2 %510 }
 0x3f3   :  { %1047 = vmatpush.xpose.msk.msrb.mxu3 %vm154_vm8, %v511_v58 }
 0x3fa   :  { %v354_v61 = vpop.permute.xlu1 %353 }
 0x3fb   :  { %374 = vmatpush.msrb.mxu1 %v354_v61 }
 0x3fc   :  { %1040 = vmatmul.msk.f32.vlgmr.msrb.gmra.mxu1 %vm154_vm8, %v299_v60 }
 0x3fd   :  { %473 = vmatpush.msra.mxu1 %v1358_v62 }
 0x3ff   :  { %v563_v63 = vpop.permute.xlu2 %562 }
 0x400   :  { %1051 = vmatpush.xpose.msk.msrb.mxu1 %vm154_vm8, %v563_v63  ;;  %v1414_v63 = vld [vmem:[%s1515_s6] ss:$0 sm:$0xff] }
 0x40f   :  { %v589_v7 = vpop.permute.xlu0 %588 }
 0x41b   :  { %v324_v2 = vpop.f32.mrf.mxu2 }
 0x41c   :  { %1042 = vmatmul.msk.f32.vlgmr.msra.gmra.mxu3 %vm154_vm8, %v324_v2 }
 0x424   :  { %1048 = vmatmul.msk.f32.vlgmr.msrb.gmra.mxu3 %vm154_vm8, %v1316_v23 }
 0x45d   :  { %v537_v5 = vpop.permute.xlu1 %536 }
 0x45e   :  { %1049 = vmatpush.xpose.msk.msrb.mxu0 %vm154_vm8, %v537_v5 }
 0x461   :  { %1050 = vmatmul.msk.f32.vlgmr.msrb.gmra.mxu0 %vm154_vm8, %v1350_v56 }
 0x467   :  { %v350_v6 = vpop.f32.mrf.mxu3  ;;  %v402_v8 = vpop.f32.mrf.mxu2 }
 0x468   :  { %1043 = vmatmul.msk.f32.vlgmr.msrb.gmra.mxu2 %vm154_vm8, %v350_v6 }
 0x469   :  { %1053 = vmatpush.xpose.msk.msrb.mxu2 %vm154_vm8, %v589_v7 }
 0x470   :  { %1045 = vmatmul.msk.f32.vlgmr.msra.gmra.mxu2 %vm154_vm8, %v402_v8 }
 0x478   :  { %1054 = vmatmul.msk.f32.vlgmr.msrb.gmra.mxu2 %vm154_vm8, %v1334_v46 }
 0x479   :  { %v376_v9 = vpop.f32.mrf.mxu1 }
 0x47a   :  { %1044 = vmatmul.msk.f32.vlgmr.msra.gmra.mxu1 %vm154_vm8, %v376_v9 }
 0x482   :  { %1052 = vmatmul.msk.f32.vlgmr.msrb.gmra.mxu1 %vm154_vm8, %v1338_v47 }
 0x49f   :  { %v429_v11 = vpop.f32.mrf.mxu3 }
 0x4a0   :  { %v501_v20 = vsel %vm42_vm0, %v429_v11, 0.0 }
 0x4a7   :  { %v533_v13 = vpop.f32.mrf.mxu3 }
 0x4a8   :  { %v534_v14 = vadd.f32 %v1046_v12, %v533_v13 }
 0x4aa   :  { %v614_v15 = vsel %vm154_vm8, %v534_v14, -inf }
 0x4ab   :  { %615 = vmax.xlane.f32.xlu0 %v614_v15 }
 0x4de   :  { %v559_v16 = vpop.f32.mrf.mxu0 }
 0x4df   :  { %v560_v17 = vadd.f32 %v1046_v12, %v559_v16 }
 0x4e1   :  { %v617_v18 = vsel %vm154_vm8, %v560_v17, -inf }
 0x4e2   :  { %618 = vmax.xlane.f32.xlu2 %v617_v18 }
 0x4eb   :  { %v452_v19 = vpop.f32.mrf.mxu2 }
 0x4ec   :  { %v502_v21 = vsel %vm42_vm0, %v452_v19, 0.0 }
 0x4ed   :  { %v503_v22 = vadd.f32 %v502_v21, %v501_v20 }
 0x4f3   :  { %v498_v24 = vpop.f32.mrf.mxu2 }
 0x4f4   :  { %v506_v28 = vsel %vm42_vm0, %v498_v24, 0.0 }
 0x4f7   :  { %v475_v25 = vpop.f32.mrf.mxu1 }
 0x4f8   :  { %v504_v26 = vsel %vm42_vm0, %v475_v25, 0.0 }
 0x4f9   :  { %v505_v27 = vadd.f32 %v504_v26, %v503_v22  ;;  %v926_v26 = vld [vmem:[%s1516_s7 + $0x18] sm:$0xff] }
 0x4fb   :  { %v507_v29 = vadd.f32 %v506_v28, %v505_v27  ;;  %v611_v30 = vpop.f32.mrf.mxu2  ;;  %v925_v27 = vld [vmem:[%s1516_s7 + $0x10] sm:$0xff]  ;;  %v924_v28 = vld [vmem:[%s1516_s7 + $0x8] sm:$0xff] }
 0x4fc   :  { %v612_v31 = vadd.f32 %v1046_v12, %v611_v30 }
 0x4fd   :  { %v865_v60 = vadd.f32 %v507_v29, %v1239_v0  ;;  %v923_v29 = vld [vmem:[%s1516_s7] sm:$0xff] }
 0x4fe   :  { %v623_v32 = vsel %vm154_vm8, %v612_v31, -inf }
 0x4ff   :  { %624 = vmax.xlane.f32.xlu1 %v623_v32  ;;  %v585_v33 = vpop.f32.mrf.mxu1  ;;  %v1417_v5 = vadd.f32 %v1414_v63, %v865_v60  ;;  %v963_v60 = vld [vmem:[%s1518_s9 + $0x8] sm:$0xff] }
 0x500   :  { %v586_v34 = vadd.f32 %v1046_v12, %v585_v33 }
 0x501   :  { %v873_v0 = vsel %vm42_vm0, %v1417_v5, 0.0 }
 0x502   :  { %v620_v35 = vsel %vm154_vm8, %v586_v34, -inf }
 0x503   :  { %621 = vmax.xlane.f32.xlu0 %v620_v35 }
 0x517   :  { %1086 = vrot.lane.b32.xlu0 %v1085_v36, %s1172_s16 }
 0x51e   :  { %v616_v37 = vpop.xlane.xlu0 %615 }
 0x51f   :  { %v626_v38 = vsub.f32 %v534_v14, %v616_v37 }
 0x521   :  { %v630_v39 = vmul.f32 1.442695, %v626_v38 }
 0x523   :  { %1121 = vpow2.f32 %v630_v39 }
 0x529   :  { %v1122_v41 = vpop.eup %1121 }
 0x52a   :  { %v638_v42 = vsel %vm154_vm8, %v1122_v41, 0.0 }
 0x52b   :  { %639 = vadd.xlane.f32.xlu1 %v638_v42  ;;  %v917_v42 = vperm.slane %v1275_v40, 2 }
 0x555   :  { %v619_v43 = vpop.xlane.xlu2 %618 }
 0x556   :  { %v627_v44 = vsub.f32 %v560_v17, %v619_v43 }
 0x558   :  { %v632_v45 = vmul.f32 1.442695, %v627_v44 }
 0x55a   :  { %1123 = vpow2.f32 %v632_v45  ;;  %v920_v45 = vperm.slane %v1275_v40, 3 }
 0x560   :  { %v1124_v49 = vpop.eup %1123 }
 0x561   :  { %v641_v50 = vsel %vm154_vm8, %v1124_v49, 0.0 }
 0x562   :  { %642 = vadd.xlane.f32.xlu1 %v641_v50 }
 0x572   :  { %v625_v51 = vpop.xlane.xlu1 %624 }
 0x573   :  { %v629_v23 = vsub.f32 %v612_v31, %v625_v51  ;;  %v969_v51 = vld [vmem:[%s1518_s9 + $0x38] sm:$0xff] }
 0x575   :  { %v636_v46 = vmul.f32 1.442695, %v629_v23  ;;  %v968_v23 = vld [vmem:[%s1518_s9 + $0x30] sm:$0xff] }
 0x576   :  { %v622_v52 = vpop.xlane.xlu0 %621 }
 0x577   :  { %1125 = vpow2.f32 %v636_v46  ;;  %v628_v53 = vsub.f32 %v586_v34, %v622_v52  ;;  %v967_v46 = vld [vmem:[%s1518_s9 + $0x28] sm:$0xff]  ;;  %v966_v52 = vld [vmem:[%s1518_s9 + $0x20] sm:$0xff] }
 0x579   :  { %v634_v55 = vmul.f32 1.442695, %v628_v53  ;;  %v965_v53 = vld [vmem:[%s1518_s9 + $0x18] sm:$0xff] }
 0x57b   :  { %1091 = vrot.lane.b32.xlu1 %v1090_v54, %s1172_s16  ;;  %1127 = vpow2.f32 %v634_v55 }
 0x57d   :  { %v1126_v57 = vpop.eup %1125 }
 0x57e   :  { %v647_v58 = vsel %vm154_vm8, %v1126_v57, 0.0 }
 0x57f   :  { %648 = vadd.xlane.f32.xlu2 %v647_v58 }
 0x581   :  { %v1128_v59 = vpop.eup %1127 }
 0x582   :  { %v644_v61 = vsel %vm154_vm8, %v1128_v59, 0.0 }
 0x587   :  { %645 = vadd.xlane.f32.xlu2 %v644_v61 }
 0x589   :  { %v1087_v47 = vpop.permute.xlu0 %1086 }
 0x58a   :  { %v1089_v56 = vunpack.i.h.bf16 %v1087_v47  ;;  %v1088_v2 = vunpack.i.l.bf16 %v1087_v47 }
 0x58c   :  { %679 = vmatpush.msra.mxu3 %v1088_v2  ;;  %757 = vmatpush.msra.mxu2 %v1089_v56  ;;  %v962_v56 = vld [vmem:[%s1518_s9] sm:$0xff] }
 0x58e   :  { %784 = vmatpush.msrb.mxu3 %v1345_v48  ;;  %853 = vmatpush.msrb.mxu2 %v1375_v4 }
 0x58f   :  { %874 = vadd.xlane.f32.xlu2 %v873_v0 }
 0x59e   :  { %v640_v6 = vpop.xlane.xlu1 %639 }
 0x59f   :  { %1129 = vrcp.f32 %v640_v6 }
 0x5a5   :  { %v1130_v7 = vpop.eup %1129 }
 0x5a6   :  { %v654_v8 = vmul.f32 %v1130_v7, %v1122_v41 }
 0x5a8   :  { %1055 = vmatmul.msk.f32.vlgmr.msra.gmra.mxu3 %vm154_vm8, %v654_v8 }
 0x5a9   :  { %949 = vmatpush.msra.mxu3 %v926_v26 }
 0x5ab   :  { %950 = vmatpush.msra.mxu3 %v925_v27 }
 0x5ad   :  { %951 = vmatpush.msra.mxu3 %v924_v28 }
 0x5af   :  { %952 = vmatpush.msra.mxu3 %v923_v29 }
 0x5d5   :  { %v643_v9 = vpop.xlane.xlu1 %642 }
 0x5d6   :  { %1131 = vrcp.f32 %v643_v9 }
 0x5dc   :  { %v1132_v11 = vpop.eup %1131 }
 0x5dd   :  { %v655_v15 = vmul.f32 %v1132_v11, %v1124_v49 }
 0x5ed   :  { %v1092_v12 = vpop.permute.xlu1 %1091 }
 0x5ee   :  { %v1094_v13 = vunpack.i.h.bf16 %v1092_v12  ;;  %v1093_v14 = vunpack.i.l.bf16 %v1092_v12 }
 0x5f0   :  { %705 = vmatpush.msra.mxu0 %v1093_v14  ;;  %731 = vmatpush.msra.mxu1 %v1094_v13  ;;  %v1097_v13 = vld [vmem:[%s1517_s8] ss:$0 sm:$0xff]  ;;  %s1173_s8 = smov [#allocation2]  }
 0x5f1   :  { %1056 = vmatmul.msk.f32.vlgmr.msra.gmra.mxu0 %vm154_vm8, %v655_v15 }
 0x5f2   :  { %830 = vmatpush.msrb.mxu1 %v1358_v62  ;;  %v649_v48 = vpop.xlane.xlu2 %648  ;;  %807 = vmatpush.msrb.mxu0 %v1369_v3 }
 0x5f3   :  { %1133 = vrcp.f32 %v649_v48 }
 0x5f4   :  { %985 = vmatpush.msra.mxu0 %v969_v51 }
 0x5f6   :  { %986 = vmatpush.msra.mxu0 %v968_v23 }
 0x5f8   :  { %987 = vmatpush.msra.mxu0 %v967_v46 }
 0x5f9   :  { %v1134_v4 = vpop.eup %1133 }
 0x5fa   :  { %v657_v16 = vmul.f32 %v1134_v4, %v1126_v57  ;;  %v646_v17 = vpop.xlane.xlu2 %645  ;;  %988 = vmatpush.msra.mxu0 %v966_v52  ;;  %v964_v57 = vld [vmem:[%s1518_s9 + $0x10] sm:$0xff] }
 0x5fb   :  { %1135 = vrcp.f32 %v646_v17 }
 0x5fc   :  { %1058 = vmatmul.msk.f32.vlgmr.msra.gmra.mxu2 %vm154_vm8, %v657_v16  ;;  %989 = vmatpush.msra.mxu0 %v965_v53 }
 0x5fe   :  { %990 = vmatpush.msra.mxu0 %v964_v57 }
 0x600   :  { %991 = vmatpush.msra.mxu0 %v963_v60 }
 0x601   :  { %v1136_v18 = vpop.eup %1135 }
 0x602   :  { %v656_v19 = vmul.f32 %v1136_v18, %v1128_v59  ;;  %v875_v20 = vpop.xlane.xlu2 %874  ;;  %992 = vmatpush.msra.mxu0 %v962_v56  ;;  %v1098_v18 = vld [vmem:[%s1519_s10] ss:$0 sm:$0xff]  ;;  %s1014_s10 = sshll.u32 %s1173_s8, 4  ;;  %s1015_s10 = int_to_ptr.vmem [resolvable:$true] %s1014_s10 }
 0x603   :  { %v879_v21 = vmul.f32 %v875_v20, %v1250_v10 }
 0x604   :  { %1057 = vmatmul.msk.f32.vlgmr.msra.gmra.mxu1 %vm154_vm8, %v656_v19 }
 0x605   :  { %v881_v22 = vsub.f32 %v1417_v5, %v879_v21 }
 0x607   :  { %v883_v62 = vmul.f32 %v881_v22, %v881_v22 }
 0x609   :  { %v885_v24 = vsel %vm42_vm0, %v883_v62, 0.0 }
 0x60a   :  { %886 = vadd.xlane.f32.xlu2 %v885_v24 }
 0x62b   :  { %v681_v3 = vpop.f32.mrf.mxu3 }
 0x62c   :  { %1059 = vmatmul.msk.f32.vlgmr.msrb.gmra.mxu3 %vm154_vm8, %v681_v3 }
 0x66e   :  { %v707_v25 = vpop.f32.mrf.mxu0 }
 0x66f   :  { %1060 = vmatmul.msk.f32.vlgmr.msrb.gmra.mxu0 %vm154_vm8, %v707_v25 }
 0x67d   :  { %v887_v30 = vpop.xlane.xlu2 %886 }
 0x67e   :  { %v891_v31 = vmul.f32 %v887_v30, %v1250_v10 }
 0x67f   :  { %v759_v32 = vpop.f32.mrf.mxu2 }
 0x680   :  { %v893_v33 = vadd.f32 1e-05, %v891_v31  ;;  %1062 = vmatmul.msk.f32.vlgmr.msrb.gmra.mxu2 %vm154_vm8, %v759_v32 }
 0x681   :  { %v733_v34 = vpop.f32.mrf.mxu1 }
 0x682   :  { %1137 = vrsqrt.f32 %v893_v33  ;;  %1061 = vmatmul.msk.f32.vlgmr.msrb.gmra.mxu1 %vm154_vm8, %v733_v34  ;;  %vm901_vm10 = vweird.f32 %v893_v33 }
 0x688   :  { %v1138_v35 = vpop.eup %1137 }
 0x689   :  { %v896_v36 = vmul.f32 %v1138_v35, %v893_v33  ;;  %vm902_vm9 = vweird.f32 %v1138_v35 }
 0x68a   :  { %vm903_vm11 = vmor %vm901_vm10, %vm902_vm9 }
 0x68b   :  { %v897_v37 = vmul.f32 %v1138_v35, %v896_v36 }
 0x68d   :  { %v898_v38 = vmul.f32 0.5, %v897_v37 }
 0x68f   :  { %v899_v39 = vsub.f32 1.5, %v898_v38 }
 0x691   :  { %v900_v41 = vmul.f32 %v1138_v35, %v899_v39 }
 0x693   :  { %v904_v43 = vsel %vm903_vm11, %v1138_v35, %v900_v41 }
 0x694   :  { %v915_v44 = vmul.f32 %v904_v43, %v881_v22 }
 0x696   :  { %v918_v49 = vmul.f32 %v917_v42, %v915_v44 }
 0x698   :  { %v921_v50 = vadd.f32 %v920_v45, %v918_v49 }
 0x69a   :  { %1063 = vmatmul.msk.f32.vlgmr.msra.gmra.mxu3 %vm42_vm0, %v921_v50 }
 0x6af   :  { %v786_v55 = vpop.f32.mrf.mxu3 }
 0x6b0   :  { %v858_v61 = vsel %vm42_vm0, %v786_v55, 0.0 }
 0x6ec   :  { %v809_v54 = vpop.f32.mrf.mxu0 }
 0x6ed   :  { %v859_v58 = vsel %vm42_vm0, %v809_v54, 0.0 }
 0x6ee   :  { %v860_v2 = vadd.f32 %v859_v58, %v858_v61 }
 0x6ff   :  { %v832_v59 = vpop.f32.mrf.mxu1 }
 0x700   :  { %v861_v47 = vsel %vm42_vm0, %v832_v59, 0.0 }
 0x701   :  { %v862_v0 = vadd.f32 %v861_v47, %v860_v2 }
 0x703   :  { %v855_v6 = vpop.f32.mrf.mxu2 }
 0x704   :  { %v863_v7 = vsel %vm42_vm0, %v855_v6, 0.0 }
 0x705   :  { %v864_v8 = vadd.f32 %v863_v7, %v862_v0 }
 0x707   :  { %v866_v9 = vadd.f32 %v864_v8, %v1244_v1 }
 0x709   :  { %v872_v11 = vadd.f32 %v1414_v63, %v866_v9 }
 0x70b   :  { %v876_v12 = vsel %vm42_vm0, %v872_v11, 0.0 }
 0x70c   :  { %877 = vadd.xlane.f32.xlu0 %v876_v12 }
 0x71d   :  { %v954_v14 = vpop.f32.mrf.mxu3 }
 0x71e   :  { %v955_v15 = vadd.f32 %v1097_v13, %v954_v14 }
 0x720   :  { %v960_v48 = vmax.f32 %v955_v15, 0.0 }
 0x722   :  { %1065 = vmatmul.msk.f32.vlgmr.msra.gmra.mxu0 %vm970_vm12, %v960_v48 }
 0x77f   :  { %v878_v4 = vpop.xlane.xlu0 %877 }
 0x780   :  { %v880_v16 = vmul.f32 %v878_v4, %v1250_v10 }
 0x782   :  { %v882_v17 = vsub.f32 %v872_v11, %v880_v16 }
 0x784   :  { %v884_v1 = vmul.f32 %v882_v17, %v882_v17 }
 0x786   :  { %v888_v63 = vsel %vm42_vm0, %v884_v1, 0.0 }
 0x787   :  { %889 = vadd.xlane.f32.xlu2 %v888_v63 }
 0x79f   :  { %v994_v19 = vpop.f32.mrf.mxu0 }
 0x7a0   :  { %v1000_v20 = vadd.f32 %v994_v19, %v1417_v5 }
 0x7a2   :  { %v1006_v21 = vadd.f32 %v1098_v18, %v1000_v20 }
 0x7a4   :  { %1008 = vst.msk [vmem:[#allocation2] sm:$0xff] %vm42_vm0, %v1006_v21 }
 0x7fa   :  { %v890_v22 = vpop.xlane.xlu2 %889 }
 0x7fb   :  { %v892_v62 = vmul.f32 %v890_v22, %v1250_v10 }
 0x7fd   :  { %v894_v24 = vadd.f32 1e-05, %v892_v62 }
 0x7ff   :  { %1139 = vrsqrt.f32 %v894_v24  ;;  %vm911_vm14 = vweird.f32 %v894_v24 }
 0x805   :  { %v1140_v3 = vpop.eup %1139 }
 0x806   :  { %v906_v25 = vmul.f32 %v1140_v3, %v894_v24  ;;  %vm912_vm13 = vweird.f32 %v1140_v3 }
 0x807   :  { %vm913_vm15 = vmor %vm911_vm14, %vm912_vm13 }
 0x808   :  { %v907_v26 = vmul.f32 %v1140_v3, %v906_v25 }
 0x80a   :  { %v908_v27 = vmul.f32 0.5, %v907_v26 }
 0x80c   :  { %v909_v28 = vsub.f32 1.5, %v908_v27 }
 0x80e   :  { %v910_v29 = vmul.f32 %v1140_v3, %v909_v28 }
 0x810   :  { %v914_v30 = vsel %vm913_vm15, %v1140_v3, %v910_v29 }
 0x811   :  { %v916_v31 = vmul.f32 %v914_v30, %v882_v17 }
 0x813   :  { %v919_v5 = vmul.f32 %v917_v42, %v916_v31 }
 0x815   :  { %v922_v32 = vadd.f32 %v920_v45, %v919_v5 }
 0x817   :  { %1064 = vmatmul.msk.f32.gmra.mxu3 %vm42_vm0, %v922_v32 }
 0x89a   :  { %v957_v10 = vpop.f32.mrf.mxu3 }
 0x89b   :  { %v958_v33 = vadd.f32 %v1097_v13, %v957_v10 }
 0x89d   :  { %v961_v34 = vmax.f32 %v958_v33, 0.0 }
 0x89f   :  { %1066 = vmatmul.msk.f32.gmra.mxu0 %vm970_vm12, %v961_v34 }
 0x91c   :  { %v997_v35 = vpop.f32.mrf.mxu0 }
 0x91d   :  { %v1001_v36 = vadd.f32 %v997_v35, %v872_v11 }
 0x91f   :  { %v1007_v37 = vadd.f32 %v1098_v18, %v1001_v36 }
 0x921   :  { %1009 = vst.msk [vmem:[#allocation2 + $0x8] sm:$0xff] %vm42_vm0, %v1007_v37 }
 0x922   :  { %1022 = dma.vmem_to_hbm [thread:$0]  %s1015_s10, 256, %s1017_s27, [#allocation3], %s1174_s3, %s1174_s3, %s1175_s28  }
 0x923   :  { %1165 = dma.done.wait [#allocation3], 256  }
 0x924   :  { %1166 = vsyncadd [#allocation3], 4294967040 }
 0x925   :  { %1027 = vsyncpa [#allocation3], 1 }

</bundles_post_ra>
